<compile_context>
chip_gen: v6e
topology: v6e:2x2x1
jax: 0.10.0
libtpu: 0.0.40
codegen_flags: <defaults>
</compile_context>

<pallas_src>
import functools

import jax
import jax.numpy as jnp
from jax.experimental import pallas as pl
from jax.experimental.pallas import tpu as pltpu


def _round_up(x, m):
    return ((x + m - 1) // m) * m


def _bh_triplet_row_tile_kernel(emb_tile_ref, row_sq_ref, lab_row_ref,
                                emb_all_ref, col_sq_ref, lab_col_ref,
                                out_ref, *, margin, squared, valid_cols):
    i = pl.program_id(0)
    tm = emb_tile_ref.shape[0]
    b_pad = emb_all_ref.shape[0]

    # Fold the -2 of ||a-b||^2 = a.a - 2 a.b + b.b into the lhs tile (exact power-of-two
    # scale for f32/bf16): removes one (TM, B) VPU multiply per grid step.
    tile_m2 = emb_tile_ref[...] * jnp.asarray(-2.0, emb_tile_ref.dtype)   # (TM, D)

    # tile @ rhs^T without materializing a transpose: contract dim 1 of both operands.
    # Mosaic lowers this as a transposed-RHS MXU feed (no per-step XLU vxpose of the
    # resident (B, D) buffer).
    neg2_dot = jax.lax.dot_general(
        tile_m2, emb_all_ref[...],
        dimension_numbers=(((1,), (1,)), ((), ())),
        preferred_element_type=jnp.float32)                               # (TM, B) f32

    row_sq = row_sq_ref[...]                                              # (TM, 1) f32
    col_sq = col_sq_ref[...]                                              # (1, B)  f32
    dist_sq = jnp.maximum(col_sq + neg2_dot + row_sq, 0.0)                # (TM, B)

    # --- triplet masks (boolean; no float-mask temporaries) --------------------------
    lab_r = lab_row_ref[...]                                              # (TM, 1) int32
    lab_c = lab_col_ref[...]                                              # (1, B)  int32
    labels_eq = lab_r == lab_c                                            # (TM, B) bool
    row_ids = i * tm + jax.lax.broadcasted_iota(jnp.int32, (tm, b_pad), 0)
    col_ids = jax.lax.broadcasted_iota(jnp.int32, (tm, b_pad), 1)
    pos_mask = jnp.logical_and(labels_eq, row_ids != col_ids)
    neg_mask = jnp.logical_not(labels_eq)
    if valid_cols != b_pad:                                               # B was padded up
        col_valid = col_ids < valid_cols
        pos_mask = jnp.logical_and(pos_mask, col_valid)
        neg_mask = jnp.logical_and(neg_mask, col_valid)
        row_max_src = jnp.where(col_valid, dist_sq, 0.0)                  # dist_sq >= 0
    else:
        row_max_src = dist_sq

    # --- batch-hard mining on squared distances (sqrt deferred, monotone) ------------
    hp_sq = jnp.max(jnp.where(pos_mask, dist_sq, 0.0),
                    axis=1, keepdims=True)                                # (TM, 1)
    row_max_sq = jnp.max(row_max_src, axis=1, keepdims=True)              # (TM, 1)
    # +inf fill then a (TM,1) minimum against the row max: identical to the reference's
    # `dist + row_max * (1 - neg_mask)` construction (rows with >=1 negative already have
    # min_neg <= row_max; rows with none fall back to row_max), but avoids broadcasting
    # row_max over (TM, B) and decouples the two XLU lane reductions.
    hn_min = jnp.min(jnp.where(neg_mask, dist_sq, jnp.inf),
                     axis=1, keepdims=True)                               # (TM, 1)
    hn_sq = jnp.minimum(hn_min, row_max_sq)

    if squared:
        hp, hn = hp_sq, hn_sq
    else:
        hp = jnp.where(hp_sq > 0.0, jnp.sqrt(hp_sq), 0.0)
        hn = jnp.where(hn_sq > 0.0, jnp.sqrt(hn_sq), 0.0)

    out_ref[...] = jnp.maximum(hp - hn + margin, 0.0)


def batch_hard_triplet_loss(embeddings, labels, *, margin=5.0, squared=False,
                            block_rows=256):
    """embeddings: (B, D) float (f32 or bf16); labels: (B,) int. Returns scalar f32 loss."""
    B, D = embeddings.shape
    dtype = embeddings.dtype
    itemsize = jnp.dtype(dtype).itemsize
    sub = 16 if dtype == jnp.bfloat16 else 8          # sublane packing multiple

    # At least 2 grid steps so the "parallel" row axis shards across both v7x TensorCores.
    tm = min(_round_up(block_rows, sub),
             max(_round_up(pl.cdiv(B, 2), sub), sub))
    b_pad = _round_up(B, tm)
    grid_steps = b_pad // tm

    # Pad to a full multiple of tm (no partial-block OOB reads); padded labels get -1 and
    # padded columns are additionally masked out inside the kernel.
    if b_pad != B:
        pad = b_pad - B
        embeddings_p = jnp.pad(embeddings, ((0, pad), (0, 0)))
        labels_p = jnp.pad(labels.astype(jnp.int32), ((0, pad),), constant_values=-1)
    else:
        embeddings_p = embeddings
        labels_p = labels.astype(jnp.int32)

    # Tiny O(B*D) precompute: square-norms and labels in both row-major (B,1) and
    # lane-major (1,B) forms so no relayout is needed in the kernel.
    sq_norms = jnp.sum(embeddings_p.astype(jnp.float32) ** 2, axis=1)
    row_sq = sq_norms.reshape(b_pad, 1)
    col_sq = sq_norms.reshape(1, b_pad)
    lab_row = labels_p.reshape(b_pad, 1)
    lab_col = labels_p.reshape(1, b_pad)

    # VMEM budget: single-buffered residents + double-buffered row tiles + (TM,B) f32
    # intermediates + headroom; capped at 64 MiB (v7x per-TC physical).
    resident = b_pad * D * itemsize + 2 * b_pad * 4
    per_step = 2 * (tm * D * itemsize + 3 * tm * 4)
    temps = 6 * tm * b_pad * 4
    vmem_bytes = min(resident + per_step + temps + (4 << 20), 64 * 1024 * 1024)

    cost = pl.CostEstimate(
        flops=2 * b_pad * b_pad * D,
        bytes_accessed=b_pad * D * itemsize * (1 + grid_steps) + 6 * b_pad * 4,
        transcendentals=2 * b_pad)

    kernel = functools.partial(_bh_triplet_row_tile_kernel,
                               margin=float(margin), squared=bool(squared),
                               valid_cols=B)

    per_row = pl.pallas_call(
        kernel,
        out_shape=jax.ShapeDtypeStruct((b_pad, 1), jnp.float32),
        grid=(grid_steps,),
        in_specs=[
            pl.BlockSpec((tm, D), lambda i: (i, 0)),                   # lhs row tile (pipelined)
            pl.BlockSpec((tm, 1), lambda i: (i, 0)),                   # row square-norms tile
            pl.BlockSpec((tm, 1), lambda i: (i, 0)),                   # row labels tile
            pl.BlockSpec((b_pad, D), lambda i: (0, 0),
                         pipeline_mode=pl.Buffered(1)),                # rhs embeddings, resident
            pl.BlockSpec((1, b_pad), lambda i: (0, 0),
                         pipeline_mode=pl.Buffered(1)),                # column square-norms, resident
            pl.BlockSpec((1, b_pad), lambda i: (0, 0),
                         pipeline_mode=pl.Buffered(1)),                # column labels, resident
        ],
        out_specs=pl.BlockSpec((tm, 1), lambda i: (i, 0)),
        compiler_params=pltpu.CompilerParams(
            dimension_semantics=("parallel",),
            vmem_limit_bytes=int(vmem_bytes)),
        cost_estimate=cost,
    )(embeddings_p, row_sq, lab_row, embeddings_p, col_sq, lab_col)

    # O(B) epilogue: mean of the per-row relu'd triplet losses over the real rows only.
    return jnp.mean(per_row[:B, 0])


def _reference_loss(embeddings, labels, margin=5.0):
    """Pure-JAX reference mirroring the PyTorch forward."""
    e = embeddings.astype(jnp.float32)
    B = e.shape[0]
    dot = e @ e.T
    sq = jnp.diagonal(dot)
    dist = sq[None, :] - 2.0 * dot + sq[:, None]
    dist = jnp.maximum(dist, 0.0)
    zm = (dist == 0.0).astype(jnp.float32)
    dist = (1.0 - zm) * jnp.sqrt(dist + zm * 1e-16)
    eye = jnp.eye(B, dtype=bool)
    leq = labels[None, :] == labels[:, None]
    m_ap = (leq & ~eye).astype(jnp.float32)
    m_an = (~leq).astype(jnp.float32)
    hp = jnp.max(m_ap * dist, axis=1, keepdims=True)
    mx = jnp.max(dist, axis=1, keepdims=True)
    hn = jnp.min(dist + mx * (1.0 - m_an), axis=1, keepdims=True)
    return jnp.mean(jnp.maximum(hp - hn + margin, 0.0))


if __name__ == "__main__":
    key = jax.random.PRNGKey(0)
    k1, k2, k3, k4 = jax.random.split(key, 4)

    # Case 1: B a multiple of the chosen tile (no padding), 2 grid steps.
    B, D = 32, 64
    emb = jax.random.normal(k1, (B, D), dtype=jnp.float32)
    lab = jax.random.randint(k2, (B,), 0, 4, dtype=jnp.int32)
    loss = batch_hard_triplet_loss(emb, lab, margin=5.0)
    jax.block_until_ready(loss)
    ref = _reference_loss(emb, lab, margin=5.0)
    assert jnp.allclose(loss, ref, atol=1e-4, rtol=1e-5), (loss, ref)

    # Case 2: ragged B (exercises the padding + column-mask path), small block_rows.
    B2, D2 = 20, 48
    emb2 = jax.random.normal(k3, (B2, D2), dtype=jnp.float32)
    lab2 = jax.random.randint(k4, (B2,), 0, 3, dtype=jnp.int32)
    loss2 = batch_hard_triplet_loss(emb2, lab2, margin=5.0, block_rows=8)
    jax.block_until_ready(loss2)
    ref2 = _reference_loss(emb2, lab2, margin=5.0)
    assert jnp.allclose(loss2, ref2, atol=1e-4, rtol=1e-5), (loss2, ref2)

    # Case 3: bf16 embeddings (16-sublane tiles); smoke-run, finiteness only (bf16 MXU
    # precision makes element-exact comparison against the f32 reference inappropriate).
    loss_bf16 = batch_hard_triplet_loss(emb.astype(jnp.bfloat16), lab, margin=5.0)
    jax.block_until_ready(loss_bf16)
    assert bool(jnp.isfinite(loss_bf16)), loss_bf16

    print("KERNEL_OK")
</pallas_src>

<mosaic_0001>
module attributes {stable_mosaic.version = 11 : i64} {
  func.func @_bh_triplet_row_tile_kernel(%arg0: i32, %arg1: memref<16x64xf32, #tpu.memory_space<vmem>>, %arg2: memref<16x1xf32, #tpu.memory_space<vmem>>, %arg3: memref<16x1xi32, #tpu.memory_space<vmem>>, %arg4: memref<32x64xf32, #tpu.memory_space<vmem>>, %arg5: memref<1x32xf32, #tpu.memory_space<vmem>>, %arg6: memref<1x32xi32, #tpu.memory_space<vmem>>, %arg7: memref<16x1xf32, #tpu.memory_space<vmem>>) attributes {dimension_semantics = [#tpu.dimension_semantics<parallel>], iteration_bounds = array<i64: 2>, scalar_prefetch = 0 : i64, scratch_operands = 0 : i64, tpu.core_type = #tpu.core_type<tc>, window_params = [{transform_indices = @transform_0, window_bounds = array<i64: 16, 64>}, {transform_indices = @transform_1, window_bounds = array<i64: 16, 1>}, {transform_indices = @transform_2, window_bounds = array<i64: 16, 1>}, {pipeline_mode = #tpu.pipeline_mode<synchronous>, transform_indices = @transform_3, window_bounds = array<i64: 32, 64>}, {pipeline_mode = #tpu.pipeline_mode<synchronous>, transform_indices = @transform_4, window_bounds = array<i64: 1, 32>}, {pipeline_mode = #tpu.pipeline_mode<synchronous>, transform_indices = @transform_5, window_bounds = array<i64: 1, 32>}, {transform_indices = @transform_6, window_bounds = array<i64: 16, 1>}]} {
    %c0 = arith.constant 0 : index
    %c0_0 = arith.constant 0 : index
    %0 = vector.load %arg1[%c0, %c0_0] : memref<16x64xf32, #tpu.memory_space<vmem>>, vector<16x64xf32>
    %cst = arith.constant -2.000000e+00 : f32
    %1 = vector.broadcast %cst : f32 to vector<16x64xf32>
    %2 = arith.mulf %0, %1 : vector<16x64xf32>
    %c0_1 = arith.constant 0 : index
    %c0_2 = arith.constant 0 : index
    %3 = vector.load %arg4[%c0_1, %c0_2] : memref<32x64xf32, #tpu.memory_space<vmem>>, vector<32x64xf32>
    %cst_3 = arith.constant dense<0.000000e+00> : vector<16x32xf32>
    %4 = tpu.matmul %2, %3, %cst_3 {dimension_numbers = #tpu.dot_dimension_numbers<[1], [1], [0], [0], [0, 0, 1, 0], [], []>} : vector<16x64xf32>, vector<32x64xf32>, vector<16x32xf32> -> vector<16x32xf32>
    %c0_4 = arith.constant 0 : index
    %c0_5 = arith.constant 0 : index
    %5 = vector.load %arg2[%c0_4, %c0_5] : memref<16x1xf32, #tpu.memory_space<vmem>>, vector<16x1xf32>
    %c0_6 = arith.constant 0 : index
    %c0_7 = arith.constant 0 : index
    %6 = vector.load %arg5[%c0_6, %c0_7] : memref<1x32xf32, #tpu.memory_space<vmem>>, vector<1x32xf32>
    %7 = vector.broadcast %6 : vector<1x32xf32> to vector<16x32xf32>
    %8 = arith.addf %7, %4 : vector<16x32xf32>
    %9 = vector.broadcast %5 : vector<16x1xf32> to vector<16x32xf32>
    %10 = arith.addf %8, %9 : vector<16x32xf32>
    %cst_8 = arith.constant 0.000000e+00 : f32
    %11 = vector.broadcast %cst_8 : f32 to vector<16x32xf32>
    %12 = arith.maximumf %10, %11 : vector<16x32xf32>
    %c0_9 = arith.constant 0 : index
    %c0_10 = arith.constant 0 : index
    %13 = vector.load %arg3[%c0_9, %c0_10] : memref<16x1xi32, #tpu.memory_space<vmem>>, vector<16x1xi32>
    %c0_11 = arith.constant 0 : index
    %c0_12 = arith.constant 0 : index
    %14 = vector.load %arg6[%c0_11, %c0_12] : memref<1x32xi32, #tpu.memory_space<vmem>>, vector<1x32xi32>
    %15 = vector.broadcast %13 : vector<16x1xi32> to vector<16x32xi32>
    %16 = vector.broadcast %14 : vector<1x32xi32> to vector<16x32xi32>
    %17 = arith.cmpi eq, %15, %16 : vector<16x32xi32>
    %c16_i32 = arith.constant 16 : i32
    %18 = arith.muli %arg0, %c16_i32 : i32
    %19 = tpu.iota {dimensions = array<i32: 0>} : vector<16x32xi32>
    %20 = vector.broadcast %18 : i32 to vector<16x32xi32>
    %21 = arith.addi %20, %19 : vector<16x32xi32>
    %22 = tpu.iota {dimensions = array<i32: 1>} : vector<16x32xi32>
    %23 = arith.cmpi ne, %21, %22 : vector<16x32xi32>
    %24 = arith.andi %17, %23 : vector<16x32xi1>
    %cst_13 = arith.constant dense<true> : vector<16x32xi1>
    %25 = arith.xori %17, %cst_13 : vector<16x32xi1>
    %cst_14 = arith.constant 0.000000e+00 : f32
    %26 = vector.broadcast %cst_14 : f32 to vector<16x32xf32>
    %27 = arith.select %24, %12, %26 : vector<16x32xi1>, vector<16x32xf32>
    %cst_15 = arith.constant dense<0xFF800000> : vector<16xf32>
    %28 = vector.multi_reduction <maximumf>, %27, %cst_15 [1] : vector<16x32xf32> to vector<16xf32>
    %29 = vector.shape_cast %28 : vector<16xf32> to vector<16x1xf32>
    %cst_16 = arith.constant dense<0xFF800000> : vector<16xf32>
    %30 = vector.multi_reduction <maximumf>, %12, %cst_16 [1] : vector<16x32xf32> to vector<16xf32>
    %31 = vector.shape_cast %30 : vector<16xf32> to vector<16x1xf32>
    %cst_17 = arith.constant 0x7F800000 : f32
    %32 = vector.broadcast %cst_17 : f32 to vector<16x32xf32>
    %33 = arith.select %25, %12, %32 : vector<16x32xi1>, vector<16x32xf32>
    %cst_18 = arith.constant dense<0x7F800000> : vector<16xf32>
    %34 = vector.multi_reduction <minimumf>, %33, %cst_18 [1] : vector<16x32xf32> to vector<16xf32>
    %35 = vector.shape_cast %34 : vector<16xf32> to vector<16x1xf32>
    %36 = arith.minimumf %35, %31 : vector<16x1xf32>
    %cst_19 = arith.constant 0.000000e+00 : f32
    %37 = vector.broadcast %cst_19 : f32 to vector<16x1xf32>
    %38 = arith.cmpf ogt, %29, %37 : vector<16x1xf32>
    %39 = math.sqrt %29 : vector<16x1xf32>
    %cst_20 = arith.constant 0.000000e+00 : f32
    %40 = vector.broadcast %cst_20 : f32 to vector<16x1xf32>
    %41 = arith.select %38, %39, %40 : vector<16x1xi1>, vector<16x1xf32>
    %cst_21 = arith.constant 0.000000e+00 : f32
    %42 = vector.broadcast %cst_21 : f32 to vector<16x1xf32>
    %43 = arith.cmpf ogt, %36, %42 : vector<16x1xf32>
    %44 = math.sqrt %36 : vector<16x1xf32>
    %cst_22 = arith.constant 0.000000e+00 : f32
    %45 = vector.broadcast %cst_22 : f32 to vector<16x1xf32>
    %46 = arith.select %43, %44, %45 : vector<16x1xi1>, vector<16x1xf32>
    %47 = arith.subf %41, %46 : vector<16x1xf32>
    %cst_23 = arith.constant 5.000000e+00 : f32
    %48 = vector.broadcast %cst_23 : f32 to vector<16x1xf32>
    %49 = arith.addf %47, %48 : vector<16x1xf32>
    %cst_24 = arith.constant 0.000000e+00 : f32
    %50 = vector.broadcast %cst_24 : f32 to vector<16x1xf32>
    %51 = arith.maximumf %49, %50 : vector<16x1xf32>
    %c0_25 = arith.constant 0 : index
    %c0_26 = arith.constant 0 : index
    %52 = vector.load %arg7[%c0_25, %c0_26] : memref<16x1xf32, #tpu.memory_space<vmem>>, vector<16x1xf32>
    tpu.vector_store %arg7[%c0_25, %c0_26], %51 {strides = array<i32>} : memref<16x1xf32, #tpu.memory_space<vmem>>, vector<16x1xf32>,
    return
  }
  func.func @transform_0(%arg0: i32) -> (i32, i32) {
    %c0_i32 = arith.constant 0 : i32
    %c0_i32_0 = arith.constant 0 : i32
    return %arg0, %c0_i32 : i32, i32
  }
  func.func @transform_1(%arg0: i32) -> (i32, i32) {
    %c0_i32 = arith.constant 0 : i32
    %c0_i32_0 = arith.constant 0 : i32
    return %arg0, %c0_i32 : i32, i32
  }
  func.func @transform_2(%arg0: i32) -> (i32, i32) {
    %c0_i32 = arith.constant 0 : i32
    %c0_i32_0 = arith.constant 0 : i32
    return %arg0, %c0_i32 : i32, i32
  }
  func.func @transform_3(%arg0: i32) -> (i32, i32) {
    %c0_i32 = arith.constant 0 : i32
    %c0_i32_0 = arith.constant 0 : i32
    %c0_i32_1 = arith.constant 0 : i32
    return %c0_i32, %c0_i32_0 : i32, i32
  }
  func.func @transform_4(%arg0: i32) -> (i32, i32) {
    %c0_i32 = arith.constant 0 : i32
    %c0_i32_0 = arith.constant 0 : i32
    %c0_i32_1 = arith.constant 0 : i32
    return %c0_i32, %c0_i32_0 : i32, i32
  }
  func.func @transform_5(%arg0: i32) -> (i32, i32) {
    %c0_i32 = arith.constant 0 : i32
    %c0_i32_0 = arith.constant 0 : i32
    %c0_i32_1 = arith.constant 0 : i32
    return %c0_i32, %c0_i32_0 : i32, i32
  }
  func.func @transform_6(%arg0: i32) -> (i32, i32) {
    %c0_i32 = arith.constant 0 : i32
    %c0_i32_0 = arith.constant 0 : i32
    return %arg0, %c0_i32 : i32, i32
  }
}

</mosaic_0001>

<bundles_post_ra>
// kernel: tpu_custom_call.1
= control target key start
LH: loop header
LB: loop body
LE: loop exit
PB: predicated region body
PF: predicated region fallthrough
CT: control target
= control target key end

     0   :  { %s712_s21 = smov 0   ;;  %s782_s0 = inlined_call_operand.vmem [shape: f32[32,64], index: 0, kind: input, shape index: {}]   ;;  %s783_s1 = inlined_call_operand.vmem [shape: f32[32,1], index: 1, kind: input, shape index: {}]   ;;  %s784_s2 = inlined_call_operand.vmem [shape: s32[32,1], index: 2, kind: input, shape index: {}]   ;;  %s785_s3 = inlined_call_operand.vmem [shape: f32[32,64], index: 3, kind: input, shape index: {}]   ;;  %s786_s4 = inlined_call_operand.vmem [shape: f32[1,32], index: 4, kind: input, shape index: {}]   ;;  %s787_s5 = inlined_call_operand.vmem [shape: s32[1,32], index: 5, kind: input, shape index: {}]   ;;  %s788_s6 = inlined_call_operand.vmem [shape: f32[32,1], index: 6, kind: output, shape index: {}]  }
   0x1 LB: > { %s606_s22 = sadd.s32 4294967295, %s673_s21   ;;  %p610_p0 = scmp.ge.s32.totalorder %s673_s21, 1  ;;  %s673_s21 = sphi %s712_s21, %s16_s21  }
   0x2   : > { %p235_p1 = scmp.lt.s32.totalorder %s673_s21, 3 }
   0x4   : > { %p236_p2 = pnand %p610_p0, %p235_p1 }
   0x5   : > { %s611_s27 = sshll.u32 (!%p236_p2), %s606_s22, 1  ;;  %s627_s18 = sshll.u32 (!%p236_p2), %s606_s22, 4 }
   0x6   : > { %239 = sbr.rel (%p236_p2) target bundleno = 404 (0x194), region = 44  ;;  %p276_p3 = scmp.lt.s32.totalorder (!%p236_p2), %s611_s27, 3 }
   0xb   : > { %v306_v0 = vld [vmem:[%s785_s3 + $0x18] sm:$0xff]  ;;  %vm307_vm0 = vcmask 523264   ;;  %v305_v1 = vld [vmem:[%s785_s3 + $0x10] sm:$0xff]  ;;  %v675_v2 = vmov 0   ;;  %s790_s27 = smov (!%p276_p3, %s611_s27), 3  ;;  %v304_v3 = vld [vmem:[%s785_s3 + $0x8] sm:$0xff]  ;;  %v442_v14 = vlaneseq  ;;  %v445_v20 = vstv %s627_s18 }
   0xc   : > { %636 = vmatprep.subr.msk.mxu0 %vm307_vm0, %v306_v0  ;;  %657 = vset.pattern.permute.xlu0 %v675_v2  ;;  %s734_s30 = sshll.u32 %s790_s27, 3  ;;  %v303_v5 = vld [vmem:[%s785_s3] sm:$0xff]  ;;  %vm458_vm2 = vcmask 261120   ;;  %vm676_vm4 = vmmov 1  }
   0xd   : > { %637 = vmatpush3.xpose.msk.msra.mxu0 %vm307_vm0, %v306_v0  ;;  %658 = vset.pattern.permute.xlu1 %v675_v2  ;;  %s279_s9 = scalar_lea.vmem %s782_s0, %s734_s30  ;;  %s285_s12 = scalar_lea.vmem %s783_s1, %s734_s30  ;;  %v443_v16 = vshrl.u32 %v442_v14, 7  ;;  %v625_v17 = vld [vmem:[%s786_s4] ss:$0 sm:$0xff]  ;;  %v449_v27 = vand.u32 127, %v442_v14 }
   0xe   : > { %638 = vmatprep.subr.msk.mxu0 %vm307_vm0, %v305_v1  ;;  %v299_v4 = vld [vmem:[%s279_s9] sm:$0xff]  ;;  %s291_s15 = scalar_lea.vmem %s784_s2, %s734_s30  ;;  %v300_v9 = vld [vmem:[%s279_s9 + $0x8] sm:$0xff]  ;;  %s297_s26 = scalar_lea.vmem %s788_s6, %s734_s30 }
   0xf   : > { %v301_v6 = vmul.f32 -2.0, %v299_v4  ;;  %v401_v7 = vld [vmem:[%s285_s12] sm:$0xff]  ;;  %v402_v10 = vld [vmem:[%s285_s12 + $0x8] sm:$0xff]  ;;  %v302_v12 = vmul.f32 -2.0, %v300_v9  ;;  %v444_v25 = vadd.s32 8, %v443_v16  ;;  %v446_v26 = vadd.s32 %v445_v20, %v443_v16 }
  0x10   : > { %v426_v8 = vld [vmem:[%s291_s15] sm:$0xff]  ;;  %414 = vperm.xlu0 %657, %v401_v7   ;;  %v427_v11 = vld [vmem:[%s291_s15 + $0x8] sm:$0xff] }
  0x11   : > { %639 = vmatpush3.xpose.msk.msra.mxu0 %vm307_vm0, %v305_v1  ;;  %430 = vperm.xlu1 %658, %v426_v8   ;;  %v626_v18 = vld [vmem:[%s787_s5] ss:$0 sm:$0xff]  ;;  %v447_v32 = vadd.s32 %v445_v20, %v444_v25  ;;  %vm450_vm6 = vcmp.ne.s32.totalorder %v446_v26, %v449_v27 }
  0x12   : > { %640 = vmatprep.subr.msk.mxu0 %vm307_vm0, %v304_v3  ;;  %644 = vmatprep.mubr.msk.f32.mxu0 %vm307_vm0, %v301_v6 }
  0x13   : > { %vm451_vm9 = vcmp.ne.s32.totalorder %v447_v32, %v449_v27 }
  0x14   : > { %419 = vperm.xlu0 %657, %v402_v10  }
  0x15   : > { %641 = vmatpush3.xpose.msk.msra.mxu0 %vm307_vm0, %v304_v3  ;;  %433 = vperm.xlu1 %658, %v427_v11  }
  0x16   : > { %642 = vmatprep.subr.msk.mxu0 %vm307_vm0, %v303_v5 }
  0x19   : > { %643 = vmatpush3.xpose.msk.msra.mxu0 %vm307_vm0, %v303_v5 }
  0x1c   : > { %645 = vmatmul.mubr.msk.f32.vlgmr.msra.gmra.mxu0 %vm307_vm0, %v302_v12 }
  0x8b   : > { %v415_v15 = vpop.permute.xlu0 %414 }
  0x8c   : > { %v431_v13 = vpop.permute.xlu1 %430 }
  0x8d   : > { %vm439_vm3 = vcmp.eq.s32.totalorder %v431_v13, %v626_v18 }
  0x8e   : > { %vm454_vm7 = vmxor %vm439_vm3, %vm676_vm4 }
  0x8f   : > { %v420_v23 = vpop.permute.xlu0 %419  ;;  %vm452_vm8 = vmand %vm439_vm3, %vm450_vm6 }
  0x90   : > { %v434_v19 = vpop.permute.xlu1 %433 }
  0x91   : > { %vm440_vm1 = vcmp.eq.s32.totalorder %v434_v19, %v626_v18 }
  0x92   : > { %vm455_vm5 = vmxor %vm440_vm1, %vm676_vm4 }
  0x93   : > { %vm453_vm10 = vmand %vm440_vm1, %vm451_vm9 }
  0xdc   : > { %v646_v21 = vpop.f32.mrf.mxu0 }
  0xdd   : > { %v411_v22 = vadd.f32 %v646_v21, %v625_v17 }
  0xde   : > { %v392_v24 = vpop.f32.mrf.mxu0 }
  0xdf   : > { %v423_v28 = vadd.f32 %v420_v23, %v411_v22  ;;  %v410_v29 = vadd.f32 %v625_v17, %v392_v24 }
  0xe1   : > { %v425_v30 = vmax.f32 %v423_v28, 0.0  ;;  %v422_v31 = vadd.f32 %v415_v15, %v410_v29 }
  0xe3   : > { %v424_v33 = vmax.f32 %v422_v31, 0.0  ;;  %v468_v34 = vsel %vm458_vm2, %v425_v30, -inf  ;;  %v472_v35 = vsel %vm455_vm5, %v425_v30, inf  ;;  %v457_v42 = vsel %vm453_vm10, %v425_v30, 0.0 }
  0xe4   : > { %469 = vmax.xlane.f32.xlu0 %v468_v34  ;;  %v476_v38 = vsel %vm458_vm2, %v472_v35, inf  ;;  %v462_v43 = vsel %vm458_vm2, %v457_v42, -inf }
  0xe5   : > { %v471_v36 = vsel %vm454_vm7, %v424_v33, inf  ;;  %v456_v39 = vsel %vm452_vm8, %v424_v33, 0.0  ;;  %v465_v41 = vsel %vm458_vm2, %v424_v33, -inf  ;;  %vm523_vm7 = vcmask 7168  }
  0xe6   : > { %v473_v37 = vsel %vm458_vm2, %v471_v36, inf  ;;  %v459_v40 = vsel %vm458_vm2, %v456_v39, -inf }
  0xe7   : > { %474 = vmin.xlane.f32.xlu1 %v473_v37 }
  0xe8   : > { %477 = vmin.xlane.f32.xlu0 %v476_v38 }
  0xeb   : > { %460 = vmax.xlane.f32.xlu1 %v459_v40 }
  0xec   : > { %466 = vmax.xlane.f32.xlu0 %v465_v41 }
  0xf0   : > { %463 = vmax.xlane.f32.xlu0 %v462_v43 }
 0x16d   : > { %v470_v44 = vpop.xlane.xlu0 %469 }
 0x170   : > { %v475_v45 = vpop.xlane.xlu1 %474 }
 0x171   : > { %v478_v46 = vpop.xlane.xlu0 %477 }
 0x172   : > { %v480_v47 = vmin.f32 %v478_v46, %v470_v44 }
 0x174   : > { %659 = vrsqrt.f32 %v480_v47  ;;  %v461_v48 = vpop.xlane.xlu1 %460  ;;  %vm510_vm12 = vcmp.eq.f32.partialorder %v480_v47, inf  ;;  %vm512_vm13 = vcmp.eq.f32.partialorder %v480_v47, 0.0  ;;  %v513_v0 = vand.u32 2147483648, %v480_v47 }
 0x175   : > { %661 = vrsqrt.f32 %v461_v48  ;;  %v467_v49 = vpop.xlane.xlu0 %466  ;;  %vm485_vm11 = vcmp.eq.f32.partialorder %v461_v48, inf  ;;  %v488_v58 = vand.u32 2147483648, %v461_v48  ;;  %vm481_vm14 = vcmp.gt.f32.partialorder %v461_v48, 0.0 }
 0x176   : > { %v479_v50 = vmin.f32 %v475_v45, %v467_v49  ;;  %vm487_vm15 = vcmp.eq.f32.partialorder %v461_v48, 0.0  ;;  %vm500_vm5 = vcmp.gt.f32.partialorder %v480_v47, 0.0 }
 0x178   : > { %663 = vrsqrt.f32 %v479_v50  ;;  %vm503_vm0 = vcmp.eq.f32.partialorder %v479_v50, inf  ;;  %v506_v63 = vand.u32 2147483648, %v479_v50  ;;  %vm499_vm1 = vcmp.gt.f32.partialorder %v479_v50, 0.0 }
 0x179   : > { %v464_v51 = vpop.xlane.xlu0 %463  ;;  %vm505_vm2 = vcmp.eq.f32.partialorder %v479_v50, 0.0 }
 0x17a   : > { %665 = vrsqrt.f32 %v464_v51  ;;  %vm492_vm3 = vcmp.eq.f32.partialorder %v464_v51, inf  ;;  %v495_v5 = vand.u32 2147483648, %v464_v51  ;;  %vm494_vm4 = vcmp.eq.f32.partialorder %v464_v51, 0.0 }
 0x17b   : > { %vm482_vm6 = vcmp.gt.f32.partialorder %v464_v51, 0.0 }
 0x181   : > { %v660_v52 = vpop.eup %659 }
 0x182   : > { %v662_v53 = vpop.eup %661  ;;  %v509_v54 = vmul.f32 %v660_v52, %v480_v47 }
 0x183   : > { %v484_v55 = vmul.f32 %v662_v53, %v461_v48 }
 0x184   : > { %v511_v60 = vsel %vm510_vm12, %v480_v47, %v509_v54 }
 0x185   : > { %v664_v56 = vpop.eup %663  ;;  %v486_v57 = vsel %vm485_vm11, %v461_v48, %v484_v55  ;;  %v514_v4 = vsel %vm512_vm13, %v513_v0, %v511_v60 }
 0x186   : > { %v502_v59 = vmul.f32 %v664_v56, %v479_v50  ;;  %v489_v62 = vsel %vm487_vm15, %v488_v58, %v486_v57  ;;  %v516_v11 = vsel %vm500_vm5, %v514_v4, 0.0 }
 0x187   : > { %v666_v61 = vpop.eup %665  ;;  %v497_v6 = vsel %vm481_vm14, %v489_v62, 0.0 }
 0x188   : > { %v504_v1 = vsel %vm503_vm0, %v479_v50, %v502_v59  ;;  %v491_v2 = vmul.f32 %v666_v61, %v464_v51 }
 0x189   : > { %v507_v3 = vsel %vm505_vm2, %v506_v63, %v504_v1 }
 0x18a   : > { %v515_v7 = vsel %vm499_vm1, %v507_v3, 0.0  ;;  %v493_v8 = vsel %vm492_vm3, %v464_v51, %v491_v2 }
 0x18b   : > { %v517_v9 = vsub.f32 %v497_v6, %v515_v7  ;;  %v496_v10 = vsel %vm494_vm4, %v495_v5, %v493_v8 }
 0x18c   : > { %v498_v12 = vsel %vm482_vm6, %v496_v10, 0.0 }
 0x18d   : > { %v519_v13 = vadd.f32 5.0, %v517_v9  ;;  %v518_v14 = vsub.f32 %v498_v12, %v516_v11 }
 0x18f   : > { %v521_v15 = vmax.f32 %v519_v13, 0.0  ;;  %v520_v16 = vadd.f32 5.0, %v518_v14 }
 0x191   : > { %v522_v17 = vmax.f32 %v520_v16, 0.0  ;;  %524 = vst.msk [vmem:[%s297_s26] sm:$0xff] %vm523_vm7, %v521_v15 }
 0x193   : > { %525 = vst.msk [vmem:[%s297_s26 + $0x8] sm:$0xff] %vm523_vm7, %v522_v17 }
 0x194 PF: > { %s16_s21 = sadd.s32 1, %s673_s21  }
 0x195   : > { %p13_p4 = scmp.ge.s32.totalorder %s16_s21, 4  }
 0x197   :  { %15 = sbr.rel (!%p13_p4) target bundleno = 1 (0x1), region = 80 }

</bundles_post_ra>
